<compile_context>
chip_gen: v6e
topology: v6e:2x2x1
jax: 0.10.0
libtpu: 0.0.40
codegen_flags: <defaults>
</compile_context>

<pallas_src>
import functools

import jax
import jax.numpy as jnp
from jax.experimental import pallas as pl
from jax.experimental.pallas import tpu as pltpu


def _round_up(x, m):
    return ((x + m - 1) // m) * m


def _cdiv(a, b):
    return (a + b - 1) // b


def _softmax(x):
    m = jnp.max(x, axis=-1, keepdims=True)
    e = jnp.exp(x - m)
    # EUP reciprocal + VPU multiply instead of a VALU divide.
    return e * pl.reciprocal(jnp.sum(e, axis=-1, keepdims=True), approx=True)


def _single_mode_kernel(uA_ref, Wu_ref, Wg1_ref, Wg2_ref, Wp1_ref, Wp2_ref, Wp3_ref,
                        vec_ref, out_ref, *, S, P, H1, H2, NCP):
    f32 = jnp.float32

    def dot(x, w_ref):
        # matmul operands may be bf16; accumulate in f32 on the MXU.
        return jnp.dot(x.astype(w_ref.dtype), w_ref[...], preferred_element_type=f32)

    # Packed (8, Dmax) f32 slab: one row per bias / BN-scale / BN-shift vector.
    bu  = vec_ref[0:1, :S]
    s_u = vec_ref[1:2, :S]
    t_u = vec_ref[2:3, :S]
    bg1 = vec_ref[3:4, :P]
    bg2 = vec_ref[4:5, :S]
    bp1 = vec_ref[5:6, :H1]
    bp2 = vec_ref[6:7, :H2]
    bp3 = vec_ref[7:8, :NCP]

    # utterance_share -> ReLU -> BatchNorm1d (eval mode: per-feature scale/shift after ReLU)
    h = jnp.maximum(dot(uA_ref[...], Wu_ref) + bu, 0.0)
    sh = h * s_u + t_u

    # attention(sh, sh): softmax(cat([sh, sh]) @ Wg1_full) == softmax(sh @ (Wg1a + Wg1b))
    att = _softmax(dot(sh, Wg1_ref) + bg1)
    # attention_aggregator: softmax(collabrative_gate_2(att))
    agg = _softmax(dot(att, Wg2_ref) + bg2)
    upd = sh * agg

    # pred_module: (Linear + folded BN) -> ReLU -> Dropout(identity), x2, final Linear
    # (final Linear padded to 128 lanes so the store is full-vreg / unmasked).
    h1 = jnp.maximum(dot(upd, Wp1_ref) + bp1, 0.0)
    h2 = jnp.maximum(dot(h1, Wp2_ref) + bp2, 0.0)
    out_ref[...] = (dot(h2, Wp3_ref) + bp3).astype(out_ref.dtype)


def single_mode_forward(uA, p, *, target_tile_b=512, min_batch_tiles=2,
                        matmul_dtype=jnp.bfloat16):
    B, dA = uA.shape
    S = p["Wu"].shape[1]
    P = p["Wg1"].shape[1]
    H1 = p["Wp1"].shape[1]
    H2 = p["Wp2"].shape[1]
    NC = p["Wp3"].shape[1]
    nc_pad = _round_up(max(NC, 1), 128)

    md = jnp.dtype(matmul_dtype)
    # Sub-32-bit dtypes pack two rows per sublane -> 16-row granule for bf16 tiles.
    granule = 16 if md.itemsize < 4 else 8

    # Batch tiling: pick the tile COUNT first (minimal padding), then round the tile to
    # the packing granule.  min_batch_tiles>=2 keeps both v7x TensorCores busy via
    # dimension_semantics=("parallel",) once the batch is big enough to split.
    nb = max(1, _cdiv(B, max(granule, target_tile_b)))
    if B >= min_batch_tiles * granule:
        nb = max(nb, min_batch_tiles)
    tile_b = _round_up(_cdiv(B, nb), granule)
    B_pad = nb * tile_b
    uA_p = uA if B_pad == B else jnp.zeros((B_pad, dA), uA.dtype).at[:B].set(uA)

    # Lane-dense final Linear: pad to 128 output lanes; wrapper slices [:, :NC].
    Wp3_pad = jnp.zeros((H2, nc_pad), jnp.float32).at[:, :NC].set(p["Wp3"])

    # Pack all (1, d) bias/scale/shift vectors into one (8, Dmax) f32 slab -> single DMA.
    Dmax = _round_up(max(S, P, H1, H2, nc_pad), 128)
    vec = jnp.zeros((8, Dmax), jnp.float32)
    vec = vec.at[0, :S].set(p["bu"][0])
    vec = vec.at[1, :S].set(p["s_u"][0])
    vec = vec.at[2, :S].set(p["t_u"][0])
    vec = vec.at[3, :P].set(p["bg1"][0])
    vec = vec.at[4, :S].set(p["bg2"][0])
    vec = vec.at[5, :H1].set(p["bp1"][0])
    vec = vec.at[6, :H2].set(p["bp2"][0])
    vec = vec.at[7, :NC].set(p["bp3"][0])

    weights = (
        p["Wu"].astype(md), p["Wg1"].astype(md), p["Wg2"].astype(md),
        p["Wp1"].astype(md), p["Wp2"].astype(md), Wp3_pad.astype(md),
    )
    args = (uA_p.astype(md),) + weights + (vec,)

    # Activations tiled along batch; weights/vec use a constant index_map (VMEM-resident
    # across grid steps) and are single-buffered -- a second pipeline buffer for a block
    # whose index never changes is pure wasted VMEM.
    def const_spec(a):
        return pl.BlockSpec(a.shape, lambda i: (0, 0), pipeline_mode=pl.Buffered(1))

    in_specs = [pl.BlockSpec((tile_b, dA), lambda i: (i, 0))]
    in_specs += [const_spec(a) for a in args[1:]]

    # Explicit VMEM budget: single-buffered weights + packed vec + double-buffered
    # activation/output tiles + f32 intermediates, with ~25% headroom.
    w_bytes = sum(int(w.size) * md.itemsize for w in weights)
    vec_bytes = int(vec.size) * 4
    act_bytes = 2 * tile_b * dA * md.itemsize
    out_bytes = 2 * tile_b * nc_pad * 4
    interm_bytes = 4 * tile_b * max(dA, S, P, H1, H2) * 4
    vmem_limit = int(1.25 * (w_bytes + vec_bytes + act_bytes + out_bytes + interm_bytes))
    vmem_limit = max(16 << 20, min(vmem_limit + (4 << 20), 64 << 20))

    flops = 2 * B_pad * (dA * S + S * P + P * S + S * H1 + H1 * H2 + H2 * nc_pad)
    transcendentals = B_pad * (P + S + 2)
    bytes_accessed = (w_bytes + vec_bytes + B_pad * dA * md.itemsize
                      + B_pad * nc_pad * 4)

    kernel = functools.partial(_single_mode_kernel, S=S, P=P, H1=H1, H2=H2, NCP=nc_pad)

    out = pl.pallas_call(
        kernel,
        out_shape=jax.ShapeDtypeStruct((B_pad, nc_pad), jnp.float32),
        grid_spec=pltpu.PrefetchScalarGridSpec(
            num_scalar_prefetch=0,
            grid=(nb,),
            in_specs=in_specs,
            out_specs=pl.BlockSpec((tile_b, nc_pad), lambda i: (i, 0)),
        ),
        compiler_params=pltpu.CompilerParams(
            dimension_semantics=("parallel",),   # megacore sharding of batch tiles on v7x
            vmem_limit_bytes=vmem_limit,
        ),
        cost_estimate=pl.CostEstimate(
            flops=flops,
            transcendentals=transcendentals,
            bytes_accessed=bytes_accessed,
        ),
    )(*args)
    return out[:B, :NC]


def init_params(key, dA, S, P, H1, H2, NC):
    """Deterministic synthetic parameters; BN folded to scale/shift (eval mode)."""
    eps = 1e-5
    key_iter = iter(jax.random.split(key, 32))

    def nxt():
        return next(key_iter)

    def linear_wb(din, dout):
        W = 0.05 * jax.random.normal(nxt(), (din, dout), jnp.float32)
        b = 0.05 * jax.random.normal(nxt(), (1, dout), jnp.float32)
        return W, b

    def bn_scale_shift(d):
        gamma = 1.0 + 0.1 * jax.random.normal(nxt(), (1, d), jnp.float32)
        beta = 0.1 * jax.random.normal(nxt(), (1, d), jnp.float32)
        mean = 0.1 * jax.random.normal(nxt(), (1, d), jnp.float32)
        var = jax.random.uniform(nxt(), (1, d), jnp.float32, minval=0.5, maxval=1.5)
        scale = gamma / jnp.sqrt(var + eps)
        shift = beta - mean * scale
        return scale, shift

    p = {}
    p["Wu"], p["bu"] = linear_wb(dA, S)          # utterance_share
    p["s_u"], p["t_u"] = bn_scale_shift(S)       # norm_utterance (applied after ReLU)

    Wg1_full, p["bg1"] = linear_wb(2 * S, P)     # collabrative_gate_1 (stored as (2S, P))
    p["Wg1_full"] = Wg1_full
    p["Wg1"] = Wg1_full[:S] + Wg1_full[S:]       # forward always feeds cat(f, f) -> fold
    p["Wg2"], p["bg2"] = linear_wb(P, S)         # collabrative_gate_2

    def linear_bn_folded(din, dout):
        W, b = linear_wb(din, dout)
        scale, shift = bn_scale_shift(dout)
        return W * scale, b * scale + shift

    p["Wp1"], p["bp1"] = linear_bn_folded(S, H1)    # pred Linear(S, 512') + BN folded
    p["Wp2"], p["bp2"] = linear_bn_folded(H1, H2)   # pred Linear(512', 128') + BN folded
    p["Wp3"], p["bp3"] = linear_wb(H2, NC)          # final Linear -> num_classes
    return p


def reference_forward(uA, p):
    """Pure-JAX reference mirroring the PyTorch forward (eval mode)."""
    h = jnp.maximum(uA @ p["Wu"] + p["bu"], 0.0)
    sh = h * p["s_u"] + p["t_u"]
    att = jax.nn.softmax(
        jnp.concatenate([sh, sh], axis=1) @ p["Wg1_full"] + p["bg1"], axis=1)
    agg = jax.nn.softmax(att @ p["Wg2"] + p["bg2"], axis=1)
    upd = sh * agg
    h1 = jnp.maximum(upd @ p["Wp1"] + p["bp1"], 0.0)
    h2 = jnp.maximum(h1 @ p["Wp2"] + p["bp2"], 0.0)
    return h2 @ p["Wp3"] + p["bp3"]


if __name__ == "__main__":
    # Small shapes consistent with the module's forward (scaled down from 1024/1024/512/512/128):
    B, dA = 8, 128        # batch, input_embedding_A
    S, P = 128, 128       # shared_embedding, projection_embedding
    H1, H2 = 128, 128     # pred_module hidden dims (the 512 / 128 in PyTorch, scaled down)
    NC = 5                # num_classes

    key = jax.random.PRNGKey(0)
    k_x, k_p = jax.random.split(key)
    uA = jax.random.normal(k_x, (B, dA), jnp.float32)
    params = init_params(k_p, dA, S, P, H1, H2, NC)

    ref = reference_forward(uA, params)

    # Default bf16 matmul operands (v5e/v6e/v7x MXU-native), f32 accumulation/elementwise.
    out_bf16 = jax.block_until_ready(single_mode_forward(uA, params))
    assert out_bf16.shape == (B, NC)
    assert jnp.allclose(out_bf16, ref, rtol=1e-1, atol=1e-1), (out_bf16, ref)

    # f32 matmul path (tighter tolerance).
    out_f32 = jax.block_until_ready(
        single_mode_forward(uA, params, matmul_dtype=jnp.float32))
    assert out_f32.shape == (B, NC)
    assert jnp.allclose(out_f32, ref, rtol=2e-2, atol=2e-2), (out_f32, ref)

    print("KERNEL_OK")
</pallas_src>

<mosaic_0001>
module attributes {stable_mosaic.version = 11 : i64} {
  func.func @_single_mode_kernel(%arg0: i32, %arg1: memref<16x128xbf16, #tpu.memory_space<vmem>>, %arg2: memref<128x128xbf16, #tpu.memory_space<vmem>>, %arg3: memref<128x128xbf16, #tpu.memory_space<vmem>>, %arg4: memref<128x128xbf16, #tpu.memory_space<vmem>>, %arg5: memref<128x128xbf16, #tpu.memory_space<vmem>>, %arg6: memref<128x128xbf16, #tpu.memory_space<vmem>>, %arg7: memref<128x128xbf16, #tpu.memory_space<vmem>>, %arg8: memref<8x128xf32, #tpu.memory_space<vmem>>, %arg9: memref<16x128xf32, #tpu.memory_space<vmem>>) attributes {dimension_semantics = [#tpu.dimension_semantics<parallel>], iteration_bounds = array<i64: 1>, scalar_prefetch = 0 : i64, scratch_operands = 0 : i64, tpu.core_type = #tpu.core_type<tc>, window_params = [{transform_indices = @transform_0, window_bounds = array<i64: 16, 128>}, {pipeline_mode = #tpu.pipeline_mode<synchronous>, transform_indices = @transform_1, window_bounds = array<i64: 128, 128>}, {pipeline_mode = #tpu.pipeline_mode<synchronous>, transform_indices = @transform_2, window_bounds = array<i64: 128, 128>}, {pipeline_mode = #tpu.pipeline_mode<synchronous>, transform_indices = @transform_3, window_bounds = array<i64: 128, 128>}, {pipeline_mode = #tpu.pipeline_mode<synchronous>, transform_indices = @transform_4, window_bounds = array<i64: 128, 128>}, {pipeline_mode = #tpu.pipeline_mode<synchronous>, transform_indices = @transform_5, window_bounds = array<i64: 128, 128>}, {pipeline_mode = #tpu.pipeline_mode<synchronous>, transform_indices = @transform_6, window_bounds = array<i64: 128, 128>}, {pipeline_mode = #tpu.pipeline_mode<synchronous>, transform_indices = @transform_7, window_bounds = array<i64: 8, 128>}, {transform_indices = @transform_8, window_bounds = array<i64: 16, 128>}]} {
    %c0 = arith.constant 0 : index
    %c0_0 = arith.constant 0 : index
    %0 = vector.load %arg8[%c0, %c0_0] : memref<8x128xf32, #tpu.memory_space<vmem>>, vector<1x128xf32>
    %c1 = arith.constant 1 : index
    %c0_1 = arith.constant 0 : index
    %1 = vector.load %arg8[%c1, %c0_1] : memref<8x128xf32, #tpu.memory_space<vmem>>, vector<1x128xf32>
    %c2 = arith.constant 2 : index
    %c0_2 = arith.constant 0 : index
    %2 = vector.load %arg8[%c2, %c0_2] : memref<8x128xf32, #tpu.memory_space<vmem>>, vector<1x128xf32>
    %c3 = arith.constant 3 : index
    %c0_3 = arith.constant 0 : index
    %3 = vector.load %arg8[%c3, %c0_3] : memref<8x128xf32, #tpu.memory_space<vmem>>, vector<1x128xf32>
    %c4 = arith.constant 4 : index
    %c0_4 = arith.constant 0 : index
    %4 = vector.load %arg8[%c4, %c0_4] : memref<8x128xf32, #tpu.memory_space<vmem>>, vector<1x128xf32>
    %c5 = arith.constant 5 : index
    %c0_5 = arith.constant 0 : index
    %5 = vector.load %arg8[%c5, %c0_5] : memref<8x128xf32, #tpu.memory_space<vmem>>, vector<1x128xf32>
    %c6 = arith.constant 6 : index
    %c0_6 = arith.constant 0 : index
    %6 = vector.load %arg8[%c6, %c0_6] : memref<8x128xf32, #tpu.memory_space<vmem>>, vector<1x128xf32>
    %c7 = arith.constant 7 : index
    %c0_7 = arith.constant 0 : index
    %7 = vector.load %arg8[%c7, %c0_7] : memref<8x128xf32, #tpu.memory_space<vmem>>, vector<1x128xf32>
    %c0_8 = arith.constant 0 : index
    %c0_9 = arith.constant 0 : index
    %8 = vector.load %arg1[%c0_8, %c0_9] : memref<16x128xbf16, #tpu.memory_space<vmem>>, vector<16x128xbf16>
    %c0_10 = arith.constant 0 : index
    %c0_11 = arith.constant 0 : index
    %9 = vector.load %arg2[%c0_10, %c0_11] : memref<128x128xbf16, #tpu.memory_space<vmem>>, vector<128x128xbf16>
    %cst = arith.constant dense<0.000000e+00> : vector<16x128xf32>
    %10 = tpu.matmul %8, %9, %cst {dimension_numbers = #tpu.dot_dimension_numbers<[1], [0], [0], [1], [0, 0, 1, 1], [], []>} : vector<16x128xbf16>, vector<128x128xbf16>, vector<16x128xf32> -> vector<16x128xf32>
    %11 = vector.broadcast %0 : vector<1x128xf32> to vector<16x128xf32>
    %12 = arith.addf %10, %11 : vector<16x128xf32>
    %cst_12 = arith.constant 0.000000e+00 : f32
    %13 = vector.broadcast %cst_12 : f32 to vector<16x128xf32>
    %14 = arith.maximumf %12, %13 : vector<16x128xf32>
    %15 = vector.broadcast %1 : vector<1x128xf32> to vector<16x128xf32>
    %16 = arith.mulf %14, %15 : vector<16x128xf32>
    %17 = vector.broadcast %2 : vector<1x128xf32> to vector<16x128xf32>
    %18 = arith.addf %16, %17 : vector<16x128xf32>
    %19 = arith.truncf %18 : vector<16x128xf32> to vector<16x128xbf16>
    %c0_13 = arith.constant 0 : index
    %c0_14 = arith.constant 0 : index
    %20 = vector.load %arg3[%c0_13, %c0_14] : memref<128x128xbf16, #tpu.memory_space<vmem>>, vector<128x128xbf16>
    %cst_15 = arith.constant dense<0.000000e+00> : vector<16x128xf32>
    %21 = tpu.matmul %19, %20, %cst_15 {dimension_numbers = #tpu.dot_dimension_numbers<[1], [0], [0], [1], [0, 0, 1, 1], [], []>} : vector<16x128xbf16>, vector<128x128xbf16>, vector<16x128xf32> -> vector<16x128xf32>
    %22 = vector.broadcast %3 : vector<1x128xf32> to vector<16x128xf32>
    %23 = arith.addf %21, %22 : vector<16x128xf32>
    %cst_16 = arith.constant dense<0xFF800000> : vector<16xf32>
    %24 = vector.multi_reduction <maximumf>, %23, %cst_16 [1] : vector<16x128xf32> to vector<16xf32>
    %25 = vector.shape_cast %24 : vector<16xf32> to vector<16x1xf32>
    %26 = vector.broadcast %25 : vector<16x1xf32> to vector<16x128xf32>
    %27 = arith.subf %23, %26 : vector<16x128xf32>
    %28 = math.exp %27 : vector<16x128xf32>
    %cst_17 = arith.constant dense<0.000000e+00> : vector<16xf32>
    %29 = vector.multi_reduction <add>, %28, %cst_17 [1] : vector<16x128xf32> to vector<16xf32>
    %30 = vector.shape_cast %29 : vector<16xf32> to vector<16x1xf32>
    %31 = tpu.reciprocal %30 {approx = true} : vector<16x1xf32> -> vector<16x1xf32>
    %32 = vector.broadcast %31 : vector<16x1xf32> to vector<16x128xf32>
    %33 = arith.mulf %28, %32 : vector<16x128xf32>
    %34 = arith.truncf %33 : vector<16x128xf32> to vector<16x128xbf16>
    %c0_18 = arith.constant 0 : index
    %c0_19 = arith.constant 0 : index
    %35 = vector.load %arg4[%c0_18, %c0_19] : memref<128x128xbf16, #tpu.memory_space<vmem>>, vector<128x128xbf16>
    %cst_20 = arith.constant dense<0.000000e+00> : vector<16x128xf32>
    %36 = tpu.matmul %34, %35, %cst_20 {dimension_numbers = #tpu.dot_dimension_numbers<[1], [0], [0], [1], [0, 0, 1, 1], [], []>} : vector<16x128xbf16>, vector<128x128xbf16>, vector<16x128xf32> -> vector<16x128xf32>
    %37 = vector.broadcast %4 : vector<1x128xf32> to vector<16x128xf32>
    %38 = arith.addf %36, %37 : vector<16x128xf32>
    %cst_21 = arith.constant dense<0xFF800000> : vector<16xf32>
    %39 = vector.multi_reduction <maximumf>, %38, %cst_21 [1] : vector<16x128xf32> to vector<16xf32>
    %40 = vector.shape_cast %39 : vector<16xf32> to vector<16x1xf32>
    %41 = vector.broadcast %40 : vector<16x1xf32> to vector<16x128xf32>
    %42 = arith.subf %38, %41 : vector<16x128xf32>
    %43 = math.exp %42 : vector<16x128xf32>
    %cst_22 = arith.constant dense<0.000000e+00> : vector<16xf32>
    %44 = vector.multi_reduction <add>, %43, %cst_22 [1] : vector<16x128xf32> to vector<16xf32>
    %45 = vector.shape_cast %44 : vector<16xf32> to vector<16x1xf32>
    %46 = tpu.reciprocal %45 {approx = true} : vector<16x1xf32> -> vector<16x1xf32>
    %47 = vector.broadcast %46 : vector<16x1xf32> to vector<16x128xf32>
    %48 = arith.mulf %43, %47 : vector<16x128xf32>
    %49 = arith.mulf %18, %48 : vector<16x128xf32>
    %50 = arith.truncf %49 : vector<16x128xf32> to vector<16x128xbf16>
    %c0_23 = arith.constant 0 : index
    %c0_24 = arith.constant 0 : index
    %51 = vector.load %arg5[%c0_23, %c0_24] : memref<128x128xbf16, #tpu.memory_space<vmem>>, vector<128x128xbf16>
    %cst_25 = arith.constant dense<0.000000e+00> : vector<16x128xf32>
    %52 = tpu.matmul %50, %51, %cst_25 {dimension_numbers = #tpu.dot_dimension_numbers<[1], [0], [0], [1], [0, 0, 1, 1], [], []>} : vector<16x128xbf16>, vector<128x128xbf16>, vector<16x128xf32> -> vector<16x128xf32>
    %53 = vector.broadcast %5 : vector<1x128xf32> to vector<16x128xf32>
    %54 = arith.addf %52, %53 : vector<16x128xf32>
    %cst_26 = arith.constant 0.000000e+00 : f32
    %55 = vector.broadcast %cst_26 : f32 to vector<16x128xf32>
    %56 = arith.maximumf %54, %55 : vector<16x128xf32>
    %57 = arith.truncf %56 : vector<16x128xf32> to vector<16x128xbf16>
    %c0_27 = arith.constant 0 : index
    %c0_28 = arith.constant 0 : index
    %58 = vector.load %arg6[%c0_27, %c0_28] : memref<128x128xbf16, #tpu.memory_space<vmem>>, vector<128x128xbf16>
    %cst_29 = arith.constant dense<0.000000e+00> : vector<16x128xf32>
    %59 = tpu.matmul %57, %58, %cst_29 {dimension_numbers = #tpu.dot_dimension_numbers<[1], [0], [0], [1], [0, 0, 1, 1], [], []>} : vector<16x128xbf16>, vector<128x128xbf16>, vector<16x128xf32> -> vector<16x128xf32>
    %60 = vector.broadcast %6 : vector<1x128xf32> to vector<16x128xf32>
    %61 = arith.addf %59, %60 : vector<16x128xf32>
    %cst_30 = arith.constant 0.000000e+00 : f32
    %62 = vector.broadcast %cst_30 : f32 to vector<16x128xf32>
    %63 = arith.maximumf %61, %62 : vector<16x128xf32>
    %64 = arith.truncf %63 : vector<16x128xf32> to vector<16x128xbf16>
    %c0_31 = arith.constant 0 : index
    %c0_32 = arith.constant 0 : index
    %65 = vector.load %arg7[%c0_31, %c0_32] : memref<128x128xbf16, #tpu.memory_space<vmem>>, vector<128x128xbf16>
    %cst_33 = arith.constant dense<0.000000e+00> : vector<16x128xf32>
    %66 = tpu.matmul %64, %65, %cst_33 {dimension_numbers = #tpu.dot_dimension_numbers<[1], [0], [0], [1], [0, 0, 1, 1], [], []>} : vector<16x128xbf16>, vector<128x128xbf16>, vector<16x128xf32> -> vector<16x128xf32>
    %67 = vector.broadcast %7 : vector<1x128xf32> to vector<16x128xf32>
    %68 = arith.addf %66, %67 : vector<16x128xf32>
    %c0_34 = arith.constant 0 : index
    %c0_35 = arith.constant 0 : index
    %69 = vector.load %arg9[%c0_34, %c0_35] : memref<16x128xf32, #tpu.memory_space<vmem>>, vector<16x128xf32>
    tpu.vector_store %arg9[%c0_34, %c0_35], %68 {strides = array<i32>} : memref<16x128xf32, #tpu.memory_space<vmem>>, vector<16x128xf32>,
    return
  }
  func.func @transform_0(%arg0: i32) -> (i32, i32) {
    %c0_i32 = arith.constant 0 : i32
    %c0_i32_0 = arith.constant 0 : i32
    return %arg0, %c0_i32 : i32, i32
  }
  func.func @transform_1(%arg0: i32) -> (i32, i32) {
    %c0_i32 = arith.constant 0 : i32
    %c0_i32_0 = arith.constant 0 : i32
    %c0_i32_1 = arith.constant 0 : i32
    return %c0_i32, %c0_i32_0 : i32, i32
  }
  func.func @transform_2(%arg0: i32) -> (i32, i32) {
    %c0_i32 = arith.constant 0 : i32
    %c0_i32_0 = arith.constant 0 : i32
    %c0_i32_1 = arith.constant 0 : i32
    return %c0_i32, %c0_i32_0 : i32, i32
  }
  func.func @transform_3(%arg0: i32) -> (i32, i32) {
    %c0_i32 = arith.constant 0 : i32
    %c0_i32_0 = arith.constant 0 : i32
    %c0_i32_1 = arith.constant 0 : i32
    return %c0_i32, %c0_i32_0 : i32, i32
  }
  func.func @transform_4(%arg0: i32) -> (i32, i32) {
    %c0_i32 = arith.constant 0 : i32
    %c0_i32_0 = arith.constant 0 : i32
    %c0_i32_1 = arith.constant 0 : i32
    return %c0_i32, %c0_i32_0 : i32, i32
  }
  func.func @transform_5(%arg0: i32) -> (i32, i32) {
    %c0_i32 = arith.constant 0 : i32
    %c0_i32_0 = arith.constant 0 : i32
    %c0_i32_1 = arith.constant 0 : i32
    return %c0_i32, %c0_i32_0 : i32, i32
  }
  func.func @transform_6(%arg0: i32) -> (i32, i32) {
    %c0_i32 = arith.constant 0 : i32
    %c0_i32_0 = arith.constant 0 : i32
    %c0_i32_1 = arith.constant 0 : i32
    return %c0_i32, %c0_i32_0 : i32, i32
  }
  func.func @transform_7(%arg0: i32) -> (i32, i32) {
    %c0_i32 = arith.constant 0 : i32
    %c0_i32_0 = arith.constant 0 : i32
    %c0_i32_1 = arith.constant 0 : i32
    return %c0_i32, %c0_i32_0 : i32, i32
  }
  func.func @transform_8(%arg0: i32) -> (i32, i32) {
    %c0_i32 = arith.constant 0 : i32
    %c0_i32_0 = arith.constant 0 : i32
    return %arg0, %c0_i32 : i32, i32
  }
}

</mosaic_0001>

<bundles_post_ra>
// kernel: tpu_custom_call.1
= control target key start
LH: loop header
LB: loop body
LE: loop exit
PB: predicated region body
PF: predicated region fallthrough
CT: control target
= control target key end

     0   :  { %13 = vsyncpa [#allocation3], 0  ;;  %s1555_s0 = inlined_call_operand.hbm [shape: bf16[16,128], index: 0, kind: input, shape index: {}]   ;;  %s1556_s1 = inlined_call_operand.hbm [shape: bf16[128,128], index: 1, kind: input, shape index: {}]   ;;  %s1557_s2 = inlined_call_operand.hbm [shape: bf16[128,128], index: 2, kind: input, shape index: {}]   ;;  %s1558_s3 = inlined_call_operand.hbm [shape: bf16[128,128], index: 3, kind: input, shape index: {}]   ;;  %s1559_s4 = inlined_call_operand.hbm [shape: bf16[128,128], index: 4, kind: input, shape index: {}]   ;;  %s1560_s5 = inlined_call_operand.hbm [shape: bf16[128,128], index: 5, kind: input, shape index: {}]   ;;  %s1561_s6 = inlined_call_operand.hbm [shape: bf16[128,128], index: 6, kind: input, shape index: {}]   ;;  %s1562_s7 = inlined_call_operand.vmem [shape: f32[8,128], index: 7, kind: input, shape index: {}]   ;;  %s1563_s8 = inlined_call_operand.hbm [shape: f32[16,128], index: 8, kind: output, shape index: {}]  }
   0x1   :  { %14 = vsyncpa [#allocation6], 0 }
   0x2   :  { %15 = vsyncpa [#allocation9], 0 }
   0x3   :  { %16 = vsyncpa [#allocation12], 0 }
   0x4   :  { %17 = vsyncpa [#allocation4], 0  ;;  %s1359_s27 = smov [#allocation5]   ;;  %s1360_s29 = smov [#allocation8]  }
   0x5   :  { %s35_s28 = sshll.u32 %s1359_s27, 4  ;;  %s59_s30 = sshll.u32 %s1360_s29, 4  ;;  %s36_s28 = int_to_ptr.vmem [resolvable:$true] %s35_s28  ;;  %s60_s30 = int_to_ptr.vmem [resolvable:$true] %s59_s30 }
   0x6   :  { %s1197_s9 = scalar_lea.vmem %s36_s28, 1024  ;;  %p1202_p1 = scmp.lt.s32.totalorder %s36_s28, %s36_s28 }
   0x7   :  { %p1198_p0 = scmp.ne.s32.totalorder %s36_s28, %s1197_s9  ;;  %p1203_p2 = scmp.lt.s32.totalorder %s1197_s9, %s1197_s9 }
   0x9   :  { %p1204_p3 = por %p1203_p2, %p1202_p1 }
   0xb   :  { %p1205_p4 = pnand %p1204_p3, %p1198_p0 }
   0xd   :  { %1208 = shalt.err (!%p1205_p4)
}
   0xe   :  { %s1361_s10 = smov 64   ;;  %s1362_s11 = smov 4  }
   0xf   :  { %41 = dma.hbm_to_vmem [thread:$0]  %s1556_s1, 1024, %s36_s28, [#allocation6], %s1361_s10, %s1361_s10, %s1362_s11  }
  0x10   :  { %s1217_s14 = scalar_lea.vmem %s60_s30, 1024  ;;  %p1222_p6 = scmp.lt.s32.totalorder %s60_s30, %s60_s30 }
  0x11   :  { %p1218_p5 = scmp.ne.s32.totalorder %s60_s30, %s1217_s14  ;;  %p1223_p7 = scmp.lt.s32.totalorder %s1217_s14, %s1217_s14 }
  0x13   :  { %p1224_p8 = por %p1223_p7, %p1222_p6 }
  0x15   :  { %p1225_p9 = pnand %p1224_p8, %p1218_p5 }
  0x17   :  { %1228 = shalt.err (!%p1225_p9)
}
  0x18   :  { %65 = dma.hbm_to_vmem [thread:$0]  %s1558_s3, 1024, %s60_s30, [#allocation9], %s1361_s10, %s1361_s10, %s1362_s11  }
  0x19   :  { %s1363_s17 = smov [#allocation11]   ;;  %s1364_s19 = smov [#allocation2]  }
  0x1a   :  { %s83_s18 = sshll.u32 %s1363_s17, 4  ;;  %s23_s20 = sshll.u32 %s1364_s19, 4  ;;  %s84_s18 = int_to_ptr.vmem [resolvable:$true] %s83_s18  ;;  %s24_s20 = int_to_ptr.vmem [resolvable:$true] %s23_s20 }
  0x1b   :  { %s1237_s1 = scalar_lea.vmem %s84_s18, 1024  ;;  %p1242_p11 = scmp.lt.s32.totalorder %s84_s18, %s84_s18 }
  0x1c   :  { %p1238_p10 = scmp.ne.s32.totalorder %s84_s18, %s1237_s1  ;;  %p1243_p12 = scmp.lt.s32.totalorder %s1237_s1, %s1237_s1 }
  0x1e   :  { %p1244_p13 = por %p1243_p12, %p1242_p11 }
  0x20   :  { %p1245_p0 = pnand %p1244_p13, %p1238_p10 }
  0x22   :  { %1248 = shalt.err (!%p1245_p0)
}
  0x23   :  { %89 = dma.hbm_to_vmem [thread:$0]  %s1560_s5, 1024, %s84_s18, [#allocation12], %s1361_s10, %s1361_s10, %s1362_s11  }
  0x24   :  { %s1257_s3 = scalar_lea.vmem %s24_s20, 128  ;;  %p1262_p2 = scmp.lt.s32.totalorder %s24_s20, %s24_s20 }
  0x25   :  { %p1258_p1 = scmp.ne.s32.totalorder %s24_s20, %s1257_s3  ;;  %p1263_p3 = scmp.lt.s32.totalorder %s1257_s3, %s1257_s3 }
  0x27   :  { %p1264_p4 = por %p1263_p3, %p1262_p2 }
  0x29   :  { %p1265_p5 = pnand %p1264_p4, %p1258_p1 }
  0x2b   :  { %1268 = shalt.err (!%p1265_p5)
}
  0x2c   :  { %29 = dma.hbm_to_vmem [thread:$0]  %s1555_s0, 128, %s24_s20, [#allocation3], %s1361_s10, %s1361_s10, %s1362_s11  }
  0x2d   :  { %s1365_s25 = smov [#allocation7]   ;;  %s1366_s27 = smov [#allocation10]  }
  0x2e   :  { %s47_s26 = sshll.u32 %s1365_s25, 4  ;;  %s71_s28 = sshll.u32 %s1366_s27, 4  ;;  %s48_s26 = int_to_ptr.vmem [resolvable:$true] %s47_s26  ;;  %s72_s28 = int_to_ptr.vmem [resolvable:$true] %s71_s28 }
  0x2f   :  { %s1277_s5 = scalar_lea.vmem %s48_s26, 1024  ;;  %p1282_p7 = scmp.lt.s32.totalorder %s48_s26, %s48_s26 }
  0x30   :  { %p1278_p6 = scmp.ne.s32.totalorder %s48_s26, %s1277_s5  ;;  %p1283_p8 = scmp.lt.s32.totalorder %s1277_s5, %s1277_s5 }
  0x32   :  { %p1284_p9 = por %p1283_p8, %p1282_p7 }
  0x34   :  { %p1285_p10 = pnand %p1284_p9, %p1278_p6 }
  0x36   :  { %1288 = shalt.err (!%p1285_p10)
}
  0x37   :  { %53 = dma.hbm_to_vmem [thread:$0]  %s1557_s2, 1024, %s48_s26, [#allocation6], %s1361_s10, %s1361_s10, %s1362_s11  }
  0x38   :  { %s1297_s0 = scalar_lea.vmem %s72_s28, 1024  ;;  %p1302_p12 = scmp.lt.s32.totalorder %s72_s28, %s72_s28 }
  0x39   :  { %p1298_p11 = scmp.ne.s32.totalorder %s72_s28, %s1297_s0  ;;  %p1303_p13 = scmp.lt.s32.totalorder %s1297_s0, %s1297_s0 }
  0x3b   :  { %p1304_p0 = por %p1303_p13, %p1302_p12 }
  0x3d   :  { %p1305_p1 = pnand %p1304_p0, %p1298_p11 }
  0x3f   :  { %1308 = shalt.err (!%p1305_p1)
}
  0x40   :  { %77 = dma.hbm_to_vmem [thread:$0]  %s1559_s4, 1024, %s72_s28, [#allocation9], %s1361_s10, %s1361_s10, %s1362_s11  }
  0x41   :  { %s1367_s13 = smov [#allocation13]  }
  0x42   :  { %s95_s14 = sshll.u32 %s1367_s13, 4  ;;  %s96_s14 = int_to_ptr.vmem [resolvable:$true] %s95_s14 }
  0x43   :  { %s1317_s15 = scalar_lea.vmem %s96_s14, 1024  ;;  %p1322_p3 = scmp.lt.s32.totalorder %s96_s14, %s96_s14 }
  0x44   :  { %p1318_p2 = scmp.ne.s32.totalorder %s96_s14, %s1317_s15  ;;  %p1323_p4 = scmp.lt.s32.totalorder %s1317_s15, %s1317_s15 }
  0x46   :  { %p1324_p5 = por %p1323_p4, %p1322_p3 }
  0x48   :  { %p1325_p6 = pnand %p1324_p5, %p1318_p2 }
  0x4a   :  { %1328 = shalt.err (!%p1325_p6)
}
  0x4b   :  { %101 = dma.hbm_to_vmem [thread:$0]  %s1561_s6, 1024, %s96_s14, [#allocation12], %s1361_s10, %s1361_s10, %s1362_s11  }
  0x4c   :  { %1349 = dma.done.wait [#allocation3], 128  }
  0x4d   :  { %1350 = vsyncadd [#allocation3], 4294967168 }
  0x4e   :  { %1351 = dma.done.wait [#allocation6], 2048  }
  0x4f   :  { %1352 = vsyncadd [#allocation6], 4294965248 }
  0x50   :  { %1353 = dma.done.wait [#allocation9], 2048  }
  0x51   :  { %1354 = vsyncadd [#allocation9], 4294965248 }
  0x52   :  { %1355 = dma.done.wait [#allocation12], 2048  }
  0x53   :  { %1356 = vsyncadd [#allocation12], 4294965248  ;;  %v1368_v0 = vmov 0.0   ;;  %vm1369_vm0 = vmmov 0   ;;  %v1124_v1 = vld [vmem:[#allocation5 + $0x38] sm:$0xff]   ;;  %v1125_v2 = vld [vmem:[#allocation5 + $0x30] sm:$0xff]  }
  0x54   :  { %990 = vmatprep.subr.bf16.mxu0 %v1368_v0  ;;  %1006 = vmatprep.mubr.msk.bf16.mxu0 %vm1369_vm0, %v1368_v0  ;;  %v1126_v3 = vld [vmem:[#allocation5 + $0x28] sm:$0xff]   ;;  %v1133_v4 = vld [vmem:[#allocation7 + $0x38] sm:$0xff]   ;;  %v1127_v5 = vld [vmem:[#allocation5 + $0x20] sm:$0xff]   ;;  %s1370_s27 = smov [#allocation14]  }
  0x55   :  { %1010 = vmatprep.subr.bf16.mxu1 %v1368_v0  ;;  %1026 = vmatprep.mubr.msk.bf16.mxu1 %vm1369_vm0, %v1368_v0  ;;  %v1134_v6 = vld [vmem:[#allocation7 + $0x30] sm:$0xff]   ;;  %v1128_v7 = vld [vmem:[#allocation5 + $0x18] sm:$0xff]   ;;  %v1135_v8 = vld [vmem:[#allocation7 + $0x28] sm:$0xff]   ;;  %s864_s28 = sshll.u32 %s1370_s27, 4  ;;  %s865_s28 = int_to_ptr.vmem [resolvable:$true] %s864_s28 }
  0x56   :  { %991 = vmatpush3.bf16.msra.mxu0 %v1124_v1  ;;  %1011 = vmatpush3.bf16.msra.mxu1 %v1133_v4  ;;  %v1129_v9 = vld [vmem:[#allocation5 + $0x10] sm:$0xff]   ;;  %v1136_v10 = vld [vmem:[#allocation7 + $0x20] sm:$0xff]   ;;  %v1130_v11 = vld [vmem:[#allocation5 + $0x8] sm:$0xff]   ;;  %s1329_s5 = scalar_lea.vmem %s865_s28, 256  ;;  %p1334_p8 = scmp.lt.s32.totalorder %s865_s28, %s865_s28 }
  0x57   :  { %992 = vmatprep.subr.bf16.mxu0 %v1368_v0  ;;  %1012 = vmatprep.subr.bf16.mxu1 %v1368_v0  ;;  %v1131_v12 = vld [vmem:[#allocation5] sm:$0xff]   ;;  %v1132_v13 = vld [vmem:[#allocation2] sm:$0xff]   ;;  %v1138_v15 = vld [vmem:[#allocation7 + $0x10] sm:$0xff]   ;;  %p1330_p7 = scmp.ne.s32.totalorder %s865_s28, %s1329_s5  ;;  %p1335_p9 = scmp.lt.s32.totalorder %s1329_s5, %s1329_s5 }
  0x58   :  { %v1137_v14 = vld [vmem:[#allocation7 + $0x18] sm:$0xff]   ;;  %v1139_v16 = vld [vmem:[#allocation7 + $0x8] sm:$0xff]   ;;  %v1140_v17 = vld [vmem:[#allocation7] sm:$0xff]  }
  0x59   :  { %v879_v18 = vld [vmem:[%s1562_s7] ss:$0 sm:$0xff]  ;;  %v889_v23 = vld [vmem:[%s1562_s7 + $0x1] ss:$0 sm:$0xff]  ;;  %v890_v29 = vld [vmem:[%s1562_s7 + $0x2] ss:$0 sm:$0xff]  ;;  %p1336_p10 = por %p1335_p9, %p1334_p8 }
  0x5a   :  { %993 = vmatpush3.bf16.msra.mxu0 %v1125_v2  ;;  %1013 = vmatpush3.bf16.msra.mxu1 %v1134_v6  ;;  %v891_v34 = vld [vmem:[%s1562_s7 + $0x3] ss:$0 sm:$0xff]  ;;  %v1142_v42 = vld [vmem:[#allocation8 + $0x30] sm:$0xff]   ;;  %v1143_v43 = vld [vmem:[#allocation8 + $0x28] sm:$0xff]  }
  0x5b   :  { %994 = vmatprep.subr.bf16.mxu0 %v1368_v0  ;;  %1014 = vmatprep.subr.bf16.mxu1 %v1368_v0  ;;  %v1141_v41 = vld [vmem:[#allocation8 + $0x38] sm:$0xff]   ;;  %v1144_v52 = vld [vmem:[#allocation8 + $0x20] sm:$0xff]   ;;  %v1146_v54 = vld [vmem:[#allocation8 + $0x10] sm:$0xff]   ;;  %p1337_p11 = pnand %p1336_p10, %p1330_p7 }
  0x5c   :  { %v1145_v53 = vld [vmem:[#allocation8 + $0x18] sm:$0xff]   ;;  %v1147_v55 = vld [vmem:[#allocation8 + $0x8] sm:$0xff]   ;;  %v1148_v56 = vld [vmem:[#allocation8] sm:$0xff]  }
  0x5d   :  { %v900_v1 = vld [vmem:[%s1562_s7 + $0x4] ss:$0 sm:$0xff] }
  0x5e   :  { %995 = vmatpush3.bf16.msra.mxu0 %v1126_v3  ;;  %1015 = vmatpush3.bf16.msra.mxu1 %v1135_v8  ;;  %v1149_v8 = vld [vmem:[#allocation10 + $0x38] sm:$0xff]  }
  0x5f   :  { %996 = vmatprep.subr.bf16.mxu0 %v1368_v0  ;;  %1016 = vmatprep.subr.bf16.mxu1 %v1368_v0 }
  0x62   :  { %997 = vmatpush3.bf16.msra.mxu0 %v1127_v5  ;;  %1017 = vmatpush3.bf16.msra.mxu1 %v1136_v10 }
  0x63   :  { %998 = vmatprep.subr.bf16.mxu0 %v1368_v0  ;;  %1018 = vmatprep.subr.bf16.mxu1 %v1368_v0 }
  0x66   :  { %999 = vmatpush3.bf16.msra.mxu0 %v1128_v7  ;;  %1019 = vmatpush3.bf16.msra.mxu1 %v1137_v14 }
  0x67   :  { %1000 = vmatprep.subr.bf16.mxu0 %v1368_v0  ;;  %1020 = vmatprep.subr.bf16.mxu1 %v1368_v0 }
  0x6a   :  { %1001 = vmatpush3.bf16.msra.mxu0 %v1129_v9  ;;  %1021 = vmatpush3.bf16.msra.mxu1 %v1138_v15  ;;  %v1150_v9 = vld [vmem:[#allocation10 + $0x30] sm:$0xff]  }
  0x6b   :  { %1002 = vmatprep.subr.bf16.mxu0 %v1368_v0  ;;  %1022 = vmatprep.subr.bf16.mxu1 %v1368_v0 }
  0x6e   :  { %1003 = vmatpush3.bf16.msra.mxu0 %v1130_v11  ;;  %1023 = vmatpush3.bf16.msra.mxu1 %v1139_v16 }
  0x6f   :  { %1004 = vmatprep.subr.bf16.mxu0 %v1368_v0  ;;  %1024 = vmatprep.subr.bf16.mxu1 %v1368_v0 }
  0x72   :  { %1005 = vmatpush3.bf16.msra.mxu0 %v1131_v12  ;;  %1025 = vmatpush3.bf16.msra.mxu1 %v1140_v17 }
  0x73   :  { %1030 = vmatprep.subr.bf16.mxu0 %v1368_v0  ;;  %1050 = vmatprep.subr.bf16.mxu1 %v1368_v0 }
  0x75   :  { %1007 = vmatmul.mubr.bf16.vlgmr.msra.gmra.mxu0 %v1132_v13 }
  0x76   :  { %1046 = vmatprep.mubr.msk.bf16.mxu0 %vm1369_vm0, %v1368_v0  ;;  %1031 = vmatpush3.bf16.msra.mxu0 %v1141_v41  ;;  %v1163_v41 = vld [vmem:[#allocation11 + $0x8] sm:$0xff]  }
  0x77   :  { %1032 = vmatprep.subr.bf16.mxu0 %v1368_v0 }
  0x7a   :  { %1033 = vmatpush3.bf16.msra.mxu0 %v1142_v42  ;;  %v1164_v42 = vld [vmem:[#allocation11] sm:$0xff]  }
  0x7b   :  { %1034 = vmatprep.subr.bf16.mxu0 %v1368_v0 }
  0x7e   :  { %1035 = vmatpush3.bf16.msra.mxu0 %v1143_v43  ;;  %v1165_v43 = vld [vmem:[#allocation13 + $0x38] sm:$0xff]  }
  0x7f   :  { %1036 = vmatprep.subr.bf16.mxu0 %v1368_v0 }
  0x82   :  { %1037 = vmatpush3.bf16.msra.mxu0 %v1144_v52 }
  0x83   :  { %1038 = vmatprep.subr.bf16.mxu0 %v1368_v0 }
  0x86   :  { %1039 = vmatpush3.bf16.msra.mxu0 %v1145_v53 }
  0x87   :  { %1040 = vmatprep.subr.bf16.mxu0 %v1368_v0 }
  0x8a   :  { %1041 = vmatpush3.bf16.msra.mxu0 %v1146_v54 }
  0x8b   :  { %1042 = vmatprep.subr.bf16.mxu0 %v1368_v0 }
  0x8e   :  { %1043 = vmatpush3.bf16.msra.mxu0 %v1147_v55 }
  0x8f   :  { %1044 = vmatprep.subr.bf16.mxu0 %v1368_v0 }
  0x92   :  { %1045 = vmatpush3.bf16.msra.mxu0 %v1148_v56  ;;  %v1170_v56 = vld [vmem:[#allocation13 + $0x10] sm:$0xff]  }
  0x93   :  { %1070 = vmatprep.subr.bf16.mxu0 %v1368_v0 }
 0x135   :  { %v244_v19 = vpop.f32.mrf.mxu0 }
 0x136   :  { %v245_v20 = vadd.f32 %v879_v18, %v244_v19  ;;  %v1152_v19 = vld [vmem:[#allocation10 + $0x20] sm:$0xff]  }
 0x137   :  { %v1008_v21 = vpop.f32.mrf.mxu0 }
 0x138   :  { %v251_v22 = vmax.f32 %v245_v20, 0.0  ;;  %v1153_v20 = vld [vmem:[#allocation10 + $0x18] sm:$0xff]   ;;  %v1154_v21 = vld [vmem:[#allocation10 + $0x10] sm:$0xff]  }
 0x139   :  { %v247_v24 = vpop.f32.mrf.mxu0 }
 0x13a   :  { %v248_v25 = vadd.f32 %v879_v18, %v247_v24  ;;  %v257_v27 = vmul.f32 %v889_v23, %v251_v22  ;;  %v1151_v18 = vld [vmem:[#allocation10 + $0x28] sm:$0xff]   ;;  %v1157_v24 = vld [vmem:[#allocation11 + $0x38] sm:$0xff]  }
 0x13b   :  { %v1009_v26 = vpop.f32.mrf.mxu0  ;;  %v1155_v22 = vld [vmem:[#allocation10 + $0x8] sm:$0xff]  }
 0x13c   :  { %v252_v28 = vmax.f32 %v248_v25, 0.0  ;;  %v1493_v31 = vadd.f32 %v890_v29, %v257_v27  ;;  %v1158_v25 = vld [vmem:[#allocation11 + $0x30] sm:$0xff]   ;;  %v1159_v26 = vld [vmem:[#allocation11 + $0x28] sm:$0xff]   ;;  %v1160_v27 = vld [vmem:[#allocation11 + $0x20] sm:$0xff]  }
 0x13e   :  { %v258_v30 = vmul.f32 %v889_v23, %v252_v28  ;;  %v1156_v23 = vld [vmem:[#allocation10] sm:$0xff]   ;;  %v1161_v28 = vld [vmem:[#allocation11 + $0x18] sm:$0xff]  }
 0x140   :  { %v1495_v32 = vadd.f32 %v890_v29, %v258_v30 }
 0x142   :  { %v265_v33 = vpack.c.bf16 %v1495_v32, %v1493_v31 }
 0x144   :  { %1027 = vmatmul.mubr.bf16.vlgmr.msra.gmra.mxu1 %v265_v33 }
 0x145   :  { %1066 = vmatprep.mubr.msk.bf16.mxu1 %vm1369_vm0, %v1368_v0  ;;  %1051 = vmatpush3.bf16.msra.mxu1 %v1149_v8 }
 0x146   :  { %1052 = vmatprep.subr.bf16.mxu1 %v1368_v0 }
 0x149   :  { %1053 = vmatpush3.bf16.msra.mxu1 %v1150_v9 }
 0x14a   :  { %1054 = vmatprep.subr.bf16.mxu1 %v1368_v0 }
 0x14d   :  { %1055 = vmatpush3.bf16.msra.mxu1 %v1151_v18 }
 0x14e   :  { %1056 = vmatprep.subr.bf16.mxu1 %v1368_v0 }
 0x151   :  { %1057 = vmatpush3.bf16.msra.mxu1 %v1152_v19 }
 0x152   :  { %1058 = vmatprep.subr.bf16.mxu1 %v1368_v0 }
 0x155   :  { %1059 = vmatpush3.bf16.msra.mxu1 %v1153_v20 }
 0x156   :  { %1060 = vmatprep.subr.bf16.mxu1 %v1368_v0 }
 0x159   :  { %1061 = vmatpush3.bf16.msra.mxu1 %v1154_v21 }
 0x15a   :  { %1062 = vmatprep.subr.bf16.mxu1 %v1368_v0 }
 0x15d   :  { %1063 = vmatpush3.bf16.msra.mxu1 %v1155_v22 }
 0x15e   :  { %1064 = vmatprep.subr.bf16.mxu1 %v1368_v0 }
 0x161   :  { %1065 = vmatpush3.bf16.msra.mxu1 %v1156_v23 }
 0x162   :  { %1090 = vmatprep.subr.bf16.mxu1 %v1368_v0 }
 0x204   :  { %v368_v35 = vpop.f32.mrf.mxu1 }
 0x205   :  { %v369_v36 = vadd.f32 %v891_v34, %v368_v35 }
 0x206   :  { %v1028_v37 = vpop.f32.mrf.mxu1 }
 0x207   :  { %375 = vmax.xlane.f32.xlu0 %v369_v36 }
 0x208   :  { %v371_v38 = vpop.f32.mrf.mxu1 }
 0x209   :  { %v372_v39 = vadd.f32 %v891_v34, %v371_v38 }
 0x20a   :  { %v1029_v40 = vpop.f32.mrf.mxu1 }
 0x20b   :  { %377 = vmax.xlane.f32.xlu0 %v372_v39  ;;  %v1162_v40 = vld [vmem:[#allocation11 + $0x10] sm:$0xff]  }
 0x290   :  { %v376_v44 = vpop.xlane.xlu0 %375 }
 0x291   :  { %v379_v45 = vsub.f32 %v369_v36, %v376_v44  ;;  %v1168_v44 = vld [vmem:[#allocation13 + $0x20] sm:$0xff]  }
 0x293   :  { %v381_v46 = vmul.f32 1.442695, %v379_v45  ;;  %v1169_v45 = vld [vmem:[#allocation13 + $0x18] sm:$0xff]  }
 0x294   :  { %v378_v47 = vpop.xlane.xlu0 %377 }
 0x295   :  { %1173 = vpow2.f32 %v381_v46  ;;  %v380_v48 = vsub.f32 %v372_v39, %v378_v47  ;;  %v909_v46 = vld [vmem:[%s1562_s7 + $0x5] ss:$0 sm:$0xff] }
 0x297   :  { %v383_v49 = vmul.f32 1.442695, %v380_v48 }
 0x299   :  { %1175 = vpow2.f32 %v383_v49 }
 0x2a2   :  { %v1174_v50 = vpop.eup %1173 }
 0x2a3   :  { %385 = vadd.xlane.f32.xlu1 %v1174_v50 }
 0x2a6   :  { %v1176_v51 = vpop.eup %1175 }
 0x2a7   :  { %387 = vadd.xlane.f32.xlu1 %v1176_v51 }
 0x32c   :  { %v386_v57 = vpop.xlane.xlu1 %385 }
 0x32d   :  { %1177 = vrcp.f32 %v386_v57  ;;  %v1171_v57 = vld [vmem:[#allocation13 + $0x8] sm:$0xff]  }
 0x330   :  { %v388_v58 = vpop.xlane.xlu1 %387 }
 0x331   :  { %1179 = vrcp.f32 %v388_v58  ;;  %v1172_v58 = vld [vmem:[#allocation13] sm:$0xff]  }
 0x33a   :  { %v1178_v59 = vpop.eup %1177 }
 0x33b   :  { %v391_v61 = vmul.f32 %v1178_v59, %v1174_v50  ;;  %v918_v59 = vld [vmem:[%s1562_s7 + $0x6] ss:$0 sm:$0xff] }
 0x33e   :  { %v1180_v60 = vpop.eup %1179 }
 0x33f   :  { %v392_v62 = vmul.f32 %v1180_v60, %v1176_v51 }
 0x341   :  { %v393_v63 = vpack.c.bf16 %v392_v62, %v391_v61 }
 0x343   :  { %1047 = vmatmul.mubr.bf16.vlgmr.msra.gmra.mxu0 %v393_v63 }
 0x344   :  { %1086 = vmatprep.mubr.msk.bf16.mxu0 %vm1369_vm0, %v1368_v0  ;;  %1071 = vmatpush3.bf16.msra.mxu0 %v1157_v24 }
 0x345   :  { %1072 = vmatprep.subr.bf16.mxu0 %v1368_v0 }
 0x348   :  { %1073 = vmatpush3.bf16.msra.mxu0 %v1158_v25 }
 0x349   :  { %1074 = vmatprep.subr.bf16.mxu0 %v1368_v0 }
 0x34c   :  { %1075 = vmatpush3.bf16.msra.mxu0 %v1159_v26 }
 0x34d   :  { %1076 = vmatprep.subr.bf16.mxu0 %v1368_v0 }
 0x350   :  { %1077 = vmatpush3.bf16.msra.mxu0 %v1160_v27 }
 0x351   :  { %1078 = vmatprep.subr.bf16.mxu0 %v1368_v0 }
 0x354   :  { %1079 = vmatpush3.bf16.msra.mxu0 %v1161_v28 }
 0x355   :  { %1080 = vmatprep.subr.bf16.mxu0 %v1368_v0 }
 0x358   :  { %1081 = vmatpush3.bf16.msra.mxu0 %v1162_v40 }
 0x359   :  { %1082 = vmatprep.subr.bf16.mxu0 %v1368_v0 }
 0x35c   :  { %1083 = vmatpush3.bf16.msra.mxu0 %v1163_v41 }
 0x35d   :  { %1084 = vmatprep.subr.bf16.mxu0 %v1368_v0 }
 0x360   :  { %1085 = vmatpush3.bf16.msra.mxu0 %v1164_v42 }
 0x403   :  { %v496_v2 = vpop.f32.mrf.mxu0 }
 0x404   :  { %v497_v3 = vadd.f32 %v900_v1, %v496_v2 }
 0x405   :  { %v1048_v4 = vpop.f32.mrf.mxu0 }
 0x406   :  { %503 = vmax.xlane.f32.xlu0 %v497_v3 }
 0x407   :  { %v499_v5 = vpop.f32.mrf.mxu0 }
 0x408   :  { %v500_v6 = vadd.f32 %v900_v1, %v499_v5 }
 0x409   :  { %v1049_v7 = vpop.f32.mrf.mxu0 }
 0x40a   :  { %505 = vmax.xlane.f32.xlu1 %v500_v6 }
 0x48f   :  { %v504_v10 = vpop.xlane.xlu0 %503 }
 0x490   :  { %v507_v11 = vsub.f32 %v497_v3, %v504_v10 }
 0x492   :  { %v509_v12 = vmul.f32 1.442695, %v507_v11 }
 0x493   :  { %v506_v13 = vpop.xlane.xlu1 %505 }
 0x494   :  { %1181 = vpow2.f32 %v509_v12  ;;  %v508_v14 = vsub.f32 %v500_v6, %v506_v13 }
 0x496   :  { %v511_v15 = vmul.f32 1.442695, %v508_v14 }
 0x498   :  { %1183 = vpow2.f32 %v511_v15 }
 0x4a1   :  { %v1182_v16 = vpop.eup %1181 }
 0x4a2   :  { %513 = vadd.xlane.f32.xlu0 %v1182_v16 }
 0x4a5   :  { %v1184_v17 = vpop.eup %1183 }
 0x4a6   :  { %515 = vadd.xlane.f32.xlu1 %v1184_v17 }
 0x52b   :  { %v514_v29 = vpop.xlane.xlu0 %513 }
 0x52c   :  { %1185 = vrcp.f32 %v514_v29 }
 0x52f   :  { %v516_v30 = vpop.xlane.xlu1 %515 }
 0x530   :  { %1187 = vrcp.f32 %v516_v30 }
 0x539   :  { %v1186_v33 = vpop.eup %1185 }
 0x53a   :  { %v519_v34 = vmul.f32 %v1186_v33, %v1182_v16 }
 0x53c   :  { %v521_v37 = vmul.f32 %v519_v34, %v1493_v31  ;;  %v1166_v31 = vld [vmem:[#allocation13 + $0x30] sm:$0xff]  }
 0x53d   :  { %v1188_v35 = vpop.eup %1187 }
 0x53e   :  { %v520_v36 = vmul.f32 %v1188_v35, %v1184_v17 }
 0x540   :  { %v522_v38 = vmul.f32 %v520_v36, %v1495_v32  ;;  %v1167_v32 = vld [vmem:[#allocation13 + $0x28] sm:$0xff]  }
 0x542   :  { %v523_v39 = vpack.c.bf16 %v522_v38, %v521_v37 }
 0x544   :  { %1067 = vmatmul.mubr.bf16.vlgmr.msra.gmra.mxu1 %v523_v39 }
 0x545   :  { %1106 = vmatprep.mubr.msk.bf16.mxu1 %vm1369_vm0, %v1368_v0  ;;  %1091 = vmatpush3.bf16.msra.mxu1 %v1165_v43 }
 0x546   :  { %1092 = vmatprep.subr.bf16.mxu1 %v1368_v0 }
 0x549   :  { %1093 = vmatpush3.bf16.msra.mxu1 %v1166_v31 }
 0x54a   :  { %1094 = vmatprep.subr.bf16.mxu1 %v1368_v0 }
 0x54d   :  { %1095 = vmatpush3.bf16.msra.mxu1 %v1167_v32 }
 0x54e   :  { %1096 = vmatprep.subr.bf16.mxu1 %v1368_v0 }
 0x551   :  { %1097 = vmatpush3.bf16.msra.mxu1 %v1168_v44 }
 0x552   :  { %1098 = vmatprep.subr.bf16.mxu1 %v1368_v0 }
 0x555   :  { %1099 = vmatpush3.bf16.msra.mxu1 %v1169_v45 }
 0x556   :  { %1100 = vmatprep.subr.bf16.mxu1 %v1368_v0 }
 0x559   :  { %1101 = vmatpush3.bf16.msra.mxu1 %v1170_v56 }
 0x55a   :  { %1102 = vmatprep.subr.bf16.mxu1 %v1368_v0 }
 0x55d   :  { %1103 = vmatpush3.bf16.msra.mxu1 %v1171_v57 }
 0x55e   :  { %1104 = vmatprep.subr.bf16.mxu1 %v1368_v0  ;;  %v927_v0 = vld [vmem:[%s1562_s7 + $0x7] ss:$0 sm:$0xff] }
 0x561   :  { %1105 = vmatpush3.bf16.msra.mxu1 %v1172_v58 }
 0x604   :  { %v626_v47 = vpop.f32.mrf.mxu1 }
 0x605   :  { %v627_v49 = vadd.f32 %v909_v46, %v626_v47 }
 0x606   :  { %v1068_v48 = vpop.f32.mrf.mxu1 }
 0x607   :  { %v633_v53 = vmax.f32 %v627_v49, 0.0 }
 0x608   :  { %v629_v50 = vpop.f32.mrf.mxu1 }
 0x609   :  { %v630_v51 = vadd.f32 %v909_v46, %v629_v50 }
 0x60a   :  { %v1069_v52 = vpop.f32.mrf.mxu1 }
 0x60b   :  { %v634_v54 = vmax.f32 %v630_v51, 0.0 }
 0x60d   :  { %v635_v55 = vpack.c.bf16 %v634_v54, %v633_v53 }
 0x60f   :  { %1087 = vmatmul.mubr.bf16.vlgmr.msra.gmra.mxu0 %v635_v55 }
 0x6cf   :  { %v738_v60 = vpop.f32.mrf.mxu0 }
 0x6d0   :  { %v739_v62 = vadd.f32 %v918_v59, %v738_v60 }
 0x6d1   :  { %v1088_v61 = vpop.f32.mrf.mxu0 }
 0x6d2   :  { %v745_v3 = vmax.f32 %v739_v62, 0.0 }
 0x6d3   :  { %v741_v63 = vpop.f32.mrf.mxu0 }
 0x6d4   :  { %v742_v1 = vadd.f32 %v918_v59, %v741_v63 }
 0x6d5   :  { %v1089_v2 = vpop.f32.mrf.mxu0 }
 0x6d6   :  { %v746_v4 = vmax.f32 %v742_v1, 0.0 }
 0x6d8   :  { %v747_v5 = vpack.c.bf16 %v746_v4, %v745_v3 }
 0x6da   :  { %1107 = vmatmul.mubr.bf16.vlgmr.msra.gmra.mxu1 %v747_v5 }
 0x79a   :  { %v850_v6 = vpop.f32.mrf.mxu1 }
 0x79b   :  { %v851_v7 = vadd.f32 %v927_v0, %v850_v6 }
 0x79c   :  { %v1108_v8 = vpop.f32.mrf.mxu1 }
 0x79d   :  { %857 = vst [vmem:[#allocation14] sm:$0xff] %v851_v7 }
 0x79e   :  { %v853_v9 = vpop.f32.mrf.mxu1 }
 0x79f   :  { %v854_v10 = vadd.f32 %v927_v0, %v853_v9 }
 0x7a0   :  { %v1109_v11 = vpop.f32.mrf.mxu1 }
 0x7a1   :  { %858 = vst [vmem:[#allocation14 + $0x8] sm:$0xff] %v854_v10 }
 0x7a2   :  { %1340 = shalt.err (!%p1337_p11)
}
 0x7a3   :  { %s1371_s29 = smov 128   ;;  %s1372_s7 = smov 8  }
 0x7a4   :  { %870 = dma.vmem_to_hbm [thread:$0]  %s865_s28, 256, %s1563_s8, [#allocation4], %s1371_s29, %s1371_s29, %s1372_s7  }
 0x7a5   :  { %1357 = dma.done.wait [#allocation4], 256  }
 0x7a6   :  { %1358 = vsyncadd [#allocation4], 4294967040 }
 0x7a7   :  { %874 = vsyncpa [#allocation3], 1 }
 0x7a8   :  { %875 = vsyncpa [#allocation6], 1 }
 0x7a9   :  { %876 = vsyncpa [#allocation9], 1 }
 0x7aa   :  { %877 = vsyncpa [#allocation12], 1 }
 0x7ab   :  { %878 = vsyncpa [#allocation4], 1 }

</bundles_post_ra>
